<compile_context>
chip_gen: v7x
topology: tpu7x:2x2x1
jax: 0.10.0
libtpu: 0.0.40
codegen_flags: <defaults>
</compile_context>

<pallas_src>
import functools
import math

import jax
import jax.numpy as jnp
from jax import lax
from jax.experimental import pallas as pl
from jax.experimental.pallas import tpu as pltpu


def _spatial_attention_kernel(x_ref, wcat_ref, vsbd_ref, bs_ref, mask_ref,
                              out_ref, *, T):
    x = x_ref[...]                       # (M, F*T), M = Bblk * N
    wcat = wcat_ref[...]                 # (F*T, 2T) = [W1*W2 | W3*I]

    # Fused channel/time contraction for lhs and rhs in a single MXU matmul.
    proj = jnp.dot(x, wcat, preferred_element_type=jnp.float32)    # (M, 2T)
    lhs = proj[:, :T]                    # (M, T)  == (x . W1) @ W2
    rhs = proj[:, T:]                    # (M, T)  ==  W3 . x

    # product[i, j] = sum_t lhs[i, t] * rhs[j, t]; only same-batch
    # (block-diagonal) entries are consumed downstream.
    product = lax.dot_general(
        lhs, rhs, dimension_numbers=(((1,), (1,)), ((), ())),
        preferred_element_type=jnp.float32)                        # (M, M)

    sig = jax.nn.sigmoid(product + bs_ref[...])                    # (M, M)

    # Block-diagonal Vs: per-batch S = Vs @ sig as one full-width MXU matmul.
    S = jnp.dot(vsbd_ref[...], sig, preferred_element_type=jnp.float32)

    # Per-batch softmax over rows (dim=1 of (B, N, N)): off-block entries are
    # pushed to -1e30 so every column normalizes over its own batch's N rows.
    S = S + mask_ref[...]
    m = jnp.max(S, axis=0, keepdims=True)
    e = jnp.exp(S - m)
    denom = jnp.sum(e, axis=0, keepdims=True)
    out_ref[0] = (e / denom).astype(out_ref.dtype)


def _pick_batch_block(B, N, target_rows=128):
    """Bblk such that Bblk*N ~= target_rows, Bblk*N % 8 == 0, without silly padding."""
    step = 8 // math.gcd(N, 8)                 # granularity keeping Bblk*N % 8 == 0
    bblk = max(1, target_rows // N)
    bblk = ((bblk + step - 1) // step) * step
    cap = ((B + step - 1) // step) * step      # never pad B beyond one block
    return max(step, min(bblk, cap))


def spatial_attention(x, W1, W2, W3, bs, Vs, *, target_rows=128):
    """x: (B, N, F, T) -> (B, N, N) spatial attention scores (float32)."""
    B, N, F, T = x.shape
    Bblk = _pick_batch_block(B, N, target_rows)
    B_pad = ((B + Bblk - 1) // Bblk) * Bblk
    G = B_pad // Bblk
    M = Bblk * N

    # --- wrapper-side preprocessing (cheap XLA ops on tiny arrays) ---------
    xf = x.astype(jnp.float32)
    if B_pad != B:
        xf = jnp.pad(xf, ((0, B_pad - B), (0, 0), (0, 0), (0, 0)))
    xf = xf.reshape(B_pad * N, F * T)                               # (B_pad*N, F*T)

    W2f = W2.astype(jnp.float32)
    w1 = W1.astype(jnp.float32)
    w3 = W3.astype(jnp.float32)
    W_lhs = (w1[:, None, None] * W2f[None, :, :]).reshape(F * T, T)
    W_rhs = (w3[:, None, None] * jnp.eye(T, dtype=jnp.float32)[None, :, :]
             ).reshape(F * T, T)
    W_cat = jnp.concatenate([W_lhs, W_rhs], axis=1)                 # (F*T, 2T)

    Vsf = Vs.astype(jnp.float32)
    bsf = bs.reshape(N, N).astype(jnp.float32)
    eye_b = jnp.eye(Bblk, dtype=jnp.float32)
    Vs_bd = jnp.kron(eye_b, Vsf)                                    # (M, M)
    bs_tiled = jnp.tile(bsf, (Bblk, Bblk))                          # (M, M)
    block_on = jnp.kron(eye_b, jnp.ones((N, N), jnp.float32))
    addmask = (1.0 - block_on) * jnp.float32(-1e30)                 # (M, M)

    kernel = functools.partial(_spatial_attention_kernel, T=T)

    grid_spec = pltpu.PrefetchScalarGridSpec(
        num_scalar_prefetch=0,
        grid=(G,),
        in_specs=[
            pl.BlockSpec((M, F * T), lambda g: (g, 0)),       # x rows for this step
            pl.BlockSpec((F * T, 2 * T), lambda g: (0, 0)),   # fused weights
            pl.BlockSpec((M, M), lambda g: (0, 0)),           # block-diagonal Vs
            pl.BlockSpec((M, M), lambda g: (0, 0)),           # tiled bs
            pl.BlockSpec((M, M), lambda g: (0, 0)),           # softmax block mask
        ],
        out_specs=pl.BlockSpec((1, M, M), lambda g: (g, 0, 0)),
    )

    out_full = pl.pallas_call(
        kernel,
        out_shape=jax.ShapeDtypeStruct((G, M, M), jnp.float32),
        grid_spec=grid_spec,
        compiler_params=pltpu.CompilerParams(
            dimension_semantics=("parallel",)),
    )(xf, W_cat, Vs_bd, bs_tiled, addmask)

    # Extract the per-batch (N, N) diagonal blocks (static slices, tiny array).
    blocks = [out_full[:, b * N:(b + 1) * N, b * N:(b + 1) * N]
              for b in range(Bblk)]                                 # each (G, N, N)
    out = jnp.stack(blocks, axis=1).reshape(B_pad, N, N)
    return out[:B]


def spatial_attention_ref(x, W1, W2, W3, bs, Vs):
    """Pure-JAX reference mirroring the PyTorch forward."""
    lhs = jnp.einsum('bnft,f->bnt', x, W1)
    lhs = jnp.matmul(lhs, W2)
    rhs = jnp.einsum('f,bnft->bnt', W3, x)              # torch.matmul(W3, x)
    rhs = jnp.swapaxes(rhs, -1, -2)                     # (B, T, N)
    product = jnp.matmul(lhs, rhs)                      # (B, N, N)
    S = jnp.matmul(Vs, jax.nn.sigmoid(product + bs))
    return jax.nn.softmax(S, axis=1)


if __name__ == "__main__":
    # Small shapes consistent with the module: B=12 exercises both batch
    # padding (12 -> 16) and a 2-step "parallel" grid; N=16 vertices, F_in=4,
    # T=8 timesteps -> each grid step works on a 128-row MXU tile.
    B, N, F, T = 12, 16, 4, 8

    key = jax.random.PRNGKey(0)
    kx, k1, k2, k3, kb, kv = jax.random.split(key, 6)

    x = jax.random.normal(kx, (B, N, F, T), dtype=jnp.float32)
    W1 = jax.random.normal(k1, (F,), dtype=jnp.float32)
    W2 = jax.random.normal(k2, (T, T), dtype=jnp.float32) * (1.0 / jnp.sqrt(T))
    W3 = jax.random.normal(k3, (F,), dtype=jnp.float32)
    bs = jax.random.normal(kb, (1, N, N), dtype=jnp.float32) * 0.1
    Vs = jax.random.normal(kv, (N, N), dtype=jnp.float32) * (1.0 / jnp.sqrt(N))

    ref = spatial_attention_ref(x, W1, W2, W3, bs, Vs)

    out = jax.block_until_ready(spatial_attention(x, W1, W2, W3, bs, Vs))
    assert out.shape == (B, N, N)
    assert jnp.allclose(out, ref, atol=2e-5, rtol=2e-5), "mismatch vs reference"

    print("KERNEL_OK")
</pallas_src>

<mosaic_0001>
module attributes {stable_mosaic.version = 11 : i64} {
  func.func @_spatial_attention_kernel(%arg0: i32, %arg1: memref<128x32xf32, #tpu.memory_space<vmem>>, %arg2: memref<32x16xf32, #tpu.memory_space<vmem>>, %arg3: memref<128x128xf32, #tpu.memory_space<vmem>>, %arg4: memref<128x128xf32, #tpu.memory_space<vmem>>, %arg5: memref<128x128xf32, #tpu.memory_space<vmem>>, %arg6: memref<1x128x128xf32, #tpu.memory_space<vmem>>) attributes {dimension_semantics = [#tpu.dimension_semantics<parallel>], iteration_bounds = array<i64: 2>, scalar_prefetch = 0 : i64, scratch_operands = 0 : i64, tpu.core_type = #tpu.core_type<tc>, window_params = [{transform_indices = @transform_0, window_bounds = array<i64: 128, 32>}, {pipeline_mode = #tpu.pipeline_mode<synchronous>, transform_indices = @transform_1, window_bounds = array<i64: 32, 16>}, {pipeline_mode = #tpu.pipeline_mode<synchronous>, transform_indices = @transform_2, window_bounds = array<i64: 128, 128>}, {pipeline_mode = #tpu.pipeline_mode<synchronous>, transform_indices = @transform_3, window_bounds = array<i64: 128, 128>}, {pipeline_mode = #tpu.pipeline_mode<synchronous>, transform_indices = @transform_4, window_bounds = array<i64: 128, 128>}, {transform_indices = @transform_5, window_bounds = array<i64: 1, 128, 128>}]} {
    %c0 = arith.constant 0 : index
    %c0_0 = arith.constant 0 : index
    %0 = vector.load %arg1[%c0, %c0_0] : memref<128x32xf32, #tpu.memory_space<vmem>>, vector<128x32xf32>
    %c0_1 = arith.constant 0 : index
    %c0_2 = arith.constant 0 : index
    %1 = vector.load %arg2[%c0_1, %c0_2] : memref<32x16xf32, #tpu.memory_space<vmem>>, vector<32x16xf32>
    %cst = arith.constant dense<0.000000e+00> : vector<128x16xf32>
    %2 = tpu.matmul %0, %1, %cst {dimension_numbers = #tpu.dot_dimension_numbers<[1], [0], [0], [1], [0, 0, 1, 1], [], []>} : vector<128x32xf32>, vector<32x16xf32>, vector<128x16xf32> -> vector<128x16xf32>
    %3 = vector.extract_strided_slice %2 {offsets = [0, 0], sizes = [128, 8], strides = [1, 1]} : vector<128x16xf32> to vector<128x8xf32>
    %4 = vector.extract_strided_slice %2 {offsets = [0, 8], sizes = [128, 8], strides = [1, 1]} : vector<128x16xf32> to vector<128x8xf32>
    %cst_3 = arith.constant dense<0.000000e+00> : vector<128x128xf32>
    %5 = tpu.matmul %3, %4, %cst_3 {dimension_numbers = #tpu.dot_dimension_numbers<[1], [1], [0], [0], [0, 0, 1, 0], [], []>} : vector<128x8xf32>, vector<128x8xf32>, vector<128x128xf32> -> vector<128x128xf32>
    %c0_4 = arith.constant 0 : index
    %c0_5 = arith.constant 0 : index
    %6 = vector.load %arg4[%c0_4, %c0_5] : memref<128x128xf32, #tpu.memory_space<vmem>>, vector<128x128xf32>
    %7 = arith.addf %5, %6 : vector<128x128xf32>
    %8 = arith.negf %7 : vector<128x128xf32>
    %9 = math.exp %8 : vector<128x128xf32>
    %cst_6 = arith.constant 1.000000e+00 : f32
    %10 = vector.broadcast %cst_6 : f32 to vector<128x128xf32>
    %11 = arith.addf %10, %9 : vector<128x128xf32>
    %12 = arith.divf %10, %11 : vector<128x128xf32>
    %c0_7 = arith.constant 0 : index
    %c0_8 = arith.constant 0 : index
    %13 = vector.load %arg3[%c0_7, %c0_8] : memref<128x128xf32, #tpu.memory_space<vmem>>, vector<128x128xf32>
    %cst_9 = arith.constant dense<0.000000e+00> : vector<128x128xf32>
    %14 = tpu.matmul %13, %12, %cst_9 {dimension_numbers = #tpu.dot_dimension_numbers<[1], [0], [0], [1], [0, 0, 1, 1], [], []>} : vector<128x128xf32>, vector<128x128xf32>, vector<128x128xf32> -> vector<128x128xf32>
    %c0_10 = arith.constant 0 : index
    %c0_11 = arith.constant 0 : index
    %15 = vector.load %arg5[%c0_10, %c0_11] : memref<128x128xf32, #tpu.memory_space<vmem>>, vector<128x128xf32>
    %16 = arith.addf %14, %15 : vector<128x128xf32>
    %cst_12 = arith.constant dense<0xFF800000> : vector<128xf32>
    %17 = vector.multi_reduction <maximumf>, %16, %cst_12 [0] : vector<128x128xf32> to vector<128xf32>
    %18 = vector.shape_cast %17 : vector<128xf32> to vector<1x128xf32>
    %19 = vector.broadcast %18 : vector<1x128xf32> to vector<128x128xf32>
    %20 = arith.subf %16, %19 : vector<128x128xf32>
    %21 = math.exp %20 : vector<128x128xf32>
    %cst_13 = arith.constant dense<0.000000e+00> : vector<128xf32>
    %22 = vector.multi_reduction <add>, %21, %cst_13 [0] : vector<128x128xf32> to vector<128xf32>
    %23 = vector.shape_cast %22 : vector<128xf32> to vector<1x128xf32>
    %24 = vector.broadcast %23 : vector<1x128xf32> to vector<128x128xf32>
    %25 = arith.divf %21, %24 : vector<128x128xf32>
    %c0_14 = arith.constant 0 : index
    %c0_15 = arith.constant 0 : index
    %c0_16 = arith.constant 0 : index
    %26 = vector.load %arg6[%c0_14, %c0_15, %c0_16] : memref<1x128x128xf32, #tpu.memory_space<vmem>>, vector<1x128x128xf32>
    %27 = vector.shape_cast %26 : vector<1x128x128xf32> to vector<128x128xf32>
    %28 = vector.shape_cast %25 : vector<128x128xf32> to vector<1x128x128xf32>
    tpu.vector_store %arg6[%c0_14, %c0_15, %c0_16], %28 {strides = array<i32>} : memref<1x128x128xf32, #tpu.memory_space<vmem>>, vector<1x128x128xf32>,
    return
  }
  func.func @transform_0(%arg0: i32) -> (i32, i32) {
    %c0_i32 = arith.constant 0 : i32
    %c0_i32_0 = arith.constant 0 : i32
    return %arg0, %c0_i32 : i32, i32
  }
  func.func @transform_1(%arg0: i32) -> (i32, i32) {
    %c0_i32 = arith.constant 0 : i32
    %c0_i32_0 = arith.constant 0 : i32
    %c0_i32_1 = arith.constant 0 : i32
    return %c0_i32, %c0_i32_0 : i32, i32
  }
  func.func @transform_2(%arg0: i32) -> (i32, i32) {
    %c0_i32 = arith.constant 0 : i32
    %c0_i32_0 = arith.constant 0 : i32
    %c0_i32_1 = arith.constant 0 : i32
    return %c0_i32, %c0_i32_0 : i32, i32
  }
  func.func @transform_3(%arg0: i32) -> (i32, i32) {
    %c0_i32 = arith.constant 0 : i32
    %c0_i32_0 = arith.constant 0 : i32
    %c0_i32_1 = arith.constant 0 : i32
    return %c0_i32, %c0_i32_0 : i32, i32
  }
  func.func @transform_4(%arg0: i32) -> (i32, i32) {
    %c0_i32 = arith.constant 0 : i32
    %c0_i32_0 = arith.constant 0 : i32
    %c0_i32_1 = arith.constant 0 : i32
    return %c0_i32, %c0_i32_0 : i32, i32
  }
  func.func @transform_5(%arg0: i32) -> (i32, i32, i32) {
    %c0_i32 = arith.constant 0 : i32
    %c0_i32_0 = arith.constant 0 : i32
    %c0_i32_1 = arith.constant 0 : i32
    return %arg0, %c0_i32, %c0_i32_0 : i32, i32, i32
  }
}

</mosaic_0001>

<bundles_post_ra>
// kernel: tpu_custom_call.1
= control target key start
LH: loop header
LB: loop body
LE: loop exit
PB: predicated region body
PF: predicated region fallthrough
CT: control target
= control target key end

     0   :  { %10 = vsyncpa [#allocation3], 0  ;;  %s2413_s0 = inlined_call_operand.vmem [shape: f32[256,32], index: 0, kind: input, shape index: {}]   ;;  %s2414_s1 = inlined_call_operand.vmem [shape: f32[32,16], index: 1, kind: input, shape index: {}]   ;;  %s2415_s2 = inlined_call_operand.vmem [shape: f32[128,128], index: 2, kind: input, shape index: {}]   ;;  %s2416_s3 = inlined_call_operand.vmem [shape: f32[128,128], index: 3, kind: input, shape index: {}]   ;;  %s2417_s4 = inlined_call_operand.hbm [shape: f32[128,128], index: 4, kind: input, shape index: {}]   ;;  %s2418_s5 = inlined_call_operand.hbm [shape: f32[2,128,128], index: 5, kind: output, shape index: {}]  }
   0x1   :  { %11 = vsyncpa [#allocation4], 0 }
   0x2   :  { %13 = vsyncpa [#allocation4 + $0x1], 0  ;;  %s1933_s18 = smov 0   ;;  %s1935_s19 = smov 0  }
   0x3   :  { %s1937_s20 = smov 0   ;;  %s1939_s21 = smov 0  }
   0x4 LB: > { %s1954_s22 = sadd.s32 4294967295, %s1894_s21   ;;  %s1212_s23 = sadd.s32 4294967294, %s1894_s21   ;;  %s1894_s21 = sphi %s1939_s21, %s2436_s21   ;;  %s1890_s20 = sphi %s1937_s20, %s2435_s20   ;;  %s1886_s19 = sphi %s1935_s19, %s2434_s19   ;;  %s1882_s18 = sphi %s1933_s18, %s2433_s18  }
   0x5   : > { %s1958_s24 = sadd.s32 1, %s1894_s21   ;;  %s136_s25 = sadd.s32 1, %s1890_s20 }
   0x6   : > { %s133_s26 = ssub.s32 %s1894_s21, %s1958_s24  ;;  %p146_p0 = scmp.ne.s32.totalorder %s1890_s20, %s1886_s19 }
   0x7   : > { %p134_p1 = scmp.eq.s32.totalorder %s133_s26, 0  ;;  %p147_p2 = scmp.eq.s32.totalorder %s1954_s22, 1 }
   0x8   : > { %p152_p3 = scmp.ne.s32.totalorder %s1886_s19, %s1882_s18  ;;  %p153_p4 = scmp.eq.s32.totalorder %s1212_s23, 1 }
   0x9   : > { %s1969_s27 = scalar_select %p134_p1, %s1890_s20, %s136_s25  }
   0xa   : > { %p1971_p5 = por %p147_p2, %p146_p0  ;;  %p1975_p6 = por %p153_p4, %p152_p3 }
   0xb   : > { %p1213_p7 = scmp.ge.s32.totalorder %s1894_s21, 1  ;;  %p160_p8 = scmp.lt.s32.totalorder %s1894_s21, 3 }
   0xc   : > { %s2422_s28 = scalar_select %p1971_p5, 1, 0 }
   0xd   : > { %s2423_s29 = scalar_select %p1975_p6, 1, 0 }
   0xe   : > { %p2419_p9 = scmp.eq.s32.totalorder %s1954_s22, 0  ;;  %p1982_p10 = pnand %p1213_p7, %p160_p8 }
   0xf   : > { %s1896_s6 = smov [#allocation2]   ;;  %s1800_s11 = scalar_lea.hbm %s2417_s4, 2048 }
  0x10   : > { %s2424_s30 = scalar_select %p1982_p10, 1, 0 }
  0x11   : > { %s181_s7 = sshll.u32 %s1896_s6, 4  ;;  %p1613_p11 = pneg %p1982_p10  ;;  %s182_s7 = int_to_ptr.vmem [resolvable:$true] %s181_s7 }
  0x12   : > { %p1801_p13 = scmp.ne.s32.totalorder %s2417_s4, %s1800_s11  ;;  %p1807_p3 = scmp.lt.u32.totalorder %s1800_s11, %s2417_s4 }
  0x13   : > { %p1990_p12 = pnand %p2419_p9, %p1613_p11 }
  0x15   : > { %p1802_p0 = pneg %p1990_p12 }
  0x17   : > { %p1803_p1 = pnand %p1802_p0, %p1801_p13 }
  0x19   : > { %p1804_p2 = pneg %p1803_p1 }
  0x1b   : > { %p1809_p4 = pnand %p1807_p3, %p1804_p2 }
  0x1d   : > { %1812 = shalt.err (!%p1809_p4)
}
  0x1e   : > { %s1813_s16 = scalar_lea.vmem %s182_s7, 2048  ;;  %p1821_p9 = scmp.lt.s32.totalorder %s182_s7, %s182_s7 }
  0x1f   : > { %p1814_p7 = scmp.ne.s32.totalorder %s182_s7, %s1813_s16  ;;  %p1822_p6 = scmp.lt.s32.totalorder %s1813_s16, %s1813_s16 }
  0x21   : > { %p1816_p8 = pnand %p1814_p7, %p1802_p0  ;;  %p1823_p5 = por %p1822_p6, %p1821_p9 }
  0x23   : > { %p1817_p11 = pneg %p1816_p8 }
  0x25   : > { %p1824_p10 = pnand %p1823_p5, %p1817_p11 }
  0x27   : > { %1827 = shalt.err (!%p1824_p10)
}
  0x28   : > { %s1897_s17 = smov 128   ;;  %s1898_s23 = smov 8  }
  0x29   : > { %1616 = dma.hbm_to_vmem [thread:$0]  (!%p1990_p12), %s2417_s4, 2048, %s182_s7, [#allocation3], %s1897_s17, %s1897_s17, %s1898_s23  }
  0x2a   : > { %p2426_p13 = scmp.ne.s32.totalorder %s2424_s30, 0 }
  0x2b   : > { %p2427_p1 = scmp.eq.s32.totalorder (!%p2426_p13), %s1954_s22, 0 }
  0x2c   : > { %206 = sbr.rel (%p2426_p13) target bundleno = 1095 (0x447), region = 40 }
  0x33   : > { %1873 = dma.done.wait (%p2427_p1), [#allocation3], 2048   ;;  %p2428_p0 = pmov %p2427_p1 }
  0x34   : > { %s1219_s6 = sshll.u32 %s1954_s22, 4  ;;  %vm260_vm0 = vcmask 261120   ;;  %v256_v0 = vld [vmem:[%s2414_s1] sm:$0xff]  ;;  %v257_v1 = vld [vmem:[%s2414_s1 + $0x8] sm:$0xff]  ;;  %v258_v2 = vld [vmem:[%s2414_s1 + $0x10] sm:$0xff]  ;;  %vm518_vm1 = vcmask 64512  }
  0x35   : > { %1875 = vsyncadd (%p2428_p0), [#allocation3], 4294965248  ;;  %p235_p5 = scmp.lt.s32.totalorder %s1219_s6, 31  ;;  %v1519_v3 = vpack.c.bf16 %v257_v1, %v256_v0  ;;  %v259_v4 = vld [vmem:[%s2414_s1 + $0x18] sm:$0xff]  ;;  %s1899_s23 = smov 120   ;;  %v462_v49 = vld [vmem:[%s2416_s3 + $0x40] sm:$0xff] }
  0x36   : > { %v1523_v6 = vpack.c.bf16 %v259_v4, %v258_v2  ;;  %vm2114_vm2 = vmpackc.low %vm518_vm1, %vm518_vm1  ;;  %s231_s25 = sand.u32 1, %s1886_s19   ;;  %p2431_p9 = scmp.ne.s32.totalorder %s2422_s28, 0 }
  0x37   : > { %s2438_s6 = smov (!%p235_p5, %s1219_s6), 31  ;;  %1520 = vmatprep.subr.bf16.mxu0 %v1519_v3  ;;  %s1218_s26 = sshll.u32 %s231_s25, 7 }
  0x38   : > { %s1220_s9 = sshll.u32 %s2438_s6, 3  ;;  %1522 = vmatpush3.bf16.msra.mxu0 %v1519_v3  ;;  %s1290_s6 = sshll.u32 %s1954_s22, 11 }
  0x39   : > { %s2020_s11 = scalar_lea.vmem %s2413_s0, %s1220_s9  ;;  %1524 = vmatprep.subr.bf16.mxu0 %v1523_v6  ;;  %s2344_s9 = scalar_lea.vmem [#allocation5], %s1218_s26 }
  0x3a   : > { %v240_v5 = vld [vmem:[%s2020_s11] sm:$0xff]  ;;  %v241_v7 = vld [vmem:[%s2020_s11 + $0x8] sm:$0xff]  ;;  %v242_v8 = vld [vmem:[%s2020_s11 + $0x10] sm:$0xff]  ;;  %s1138_s10 = sshll.u32 %s2344_s9, 4  ;;  %s2372_s30 = scalar_lea.sflag [#allocation4], %s231_s25  ;;  %s2356_s10 = int_to_ptr.vmem [resolvable:$true] %s1138_s10 }
  0x3b   : > { %1383 = vmatprep.mubr.msk.f32.mxu0 %vm260_vm0, %v240_v5  ;;  %v243_v9 = vld [vmem:[%s2020_s11 + $0x18] sm:$0xff]  ;;  %v244_v10 = vld [vmem:[%s2020_s11 + $0x20] sm:$0xff]  ;;  %v245_v11 = vld [vmem:[%s2020_s11 + $0x28] sm:$0xff]  ;;  %s1828_s7 = scalar_lea.vmem %s2356_s10, 2048  ;;  %s1900_s12 = smov [#allocation5]  }
  0x3c   : > { %1526 = vmatpush3.bf16.msra.mxu0 %v1523_v6  ;;  %v246_v12 = vld [vmem:[%s2020_s11 + $0x30] sm:$0xff]  ;;  %v247_v13 = vld [vmem:[%s2020_s11 + $0x38] sm:$0xff]  ;;  %v248_v14 = vld [vmem:[%s2020_s11 + $0x40] sm:$0xff]  ;;  %p1829_p6 = scmp.ne.s32.totalorder %s2356_s10, %s1828_s7  ;;  %s1832_s13 = sshll.u32 %s1900_s12, 4  ;;  %s1833_s13 = int_to_ptr.vmem [resolvable:$false] %s1832_s13 }
  0x3d   : > { %v249_v15 = vld [vmem:[%s2020_s11 + $0x48] sm:$0xff]  ;;  %v250_v16 = vld [vmem:[%s2020_s11 + $0x50] sm:$0xff]  ;;  %v251_v17 = vld [vmem:[%s2020_s11 + $0x58] sm:$0xff]  ;;  %s1834_s14 = scalar_lea.vmem %s1833_s13, 4096  ;;  %p1835_p2 = scmp.lt.s32.totalorder %s2356_s10, %s1833_s13 }
  0x3e   : > { %v252_v18 = vld [vmem:[%s2020_s11 + $0x60] sm:$0xff]  ;;  %v253_v19 = vld [vmem:[%s2020_s11 + $0x68] sm:$0xff]  ;;  %v254_v20 = vld [vmem:[%s2020_s11 + $0x70] sm:$0xff]  ;;  %p1830_p10 = pnand %p1829_p6, %p2431_p9  ;;  %p1836_p3 = scmp.lt.s32.totalorder %s1834_s14, %s1828_s7 }
  0x3f   : > { %1384 = vmatmul.mubr.msk.f32.vlgmr.msra.gmra.mrb[0].mxu0 %vm260_vm0, %v241_v7  ;;  %v255_v21 = vld [vmem:[%s2020_s11 + $0x78] sm:$0xff]  ;;  %s2354_s11 = scalar_lea.hbm %s2418_s5, %s1290_s6 }
  0x40   : > { %1386 = vmatprep.mubr.msk.f32.mxu0 %vm260_vm0, %v242_v8  ;;  %p1831_p12 = pneg %p1830_p10  ;;  %p1837_p4 = por %p1836_p3, %p1835_p2 }
  0x42   : > { %p1838_p7 = pnand %p1837_p4, %p1831_p12 }
  0x43   : > { %1387 = vmatmul.mubr.msk.f32.gmra.mrb[2].mxu0 %vm260_vm0, %v243_v9 }
  0x44   : > { %1389 = vmatprep.mubr.msk.f32.mxu0 %vm260_vm0, %v244_v10 }
  0x47   : > { %1390 = vmatmul.mubr.msk.f32.gmra.mrb[4].mxu0 %vm260_vm0, %v245_v11 }
  0x48   : > { %1392 = vmatprep.mubr.msk.f32.mxu0 %vm260_vm0, %v246_v12 }
  0x4b   : > { %1393 = vmatmul.mubr.msk.f32.gmra.mrb[6].mxu0 %vm260_vm0, %v247_v13 }
  0x4c   : > { %1395 = vmatprep.mubr.msk.f32.mxu0 %vm260_vm0, %v248_v14 }
  0x4f   : > { %1396 = vmatmul.mubr.msk.f32.gmra.mrb[8].mxu0 %vm260_vm0, %v249_v15  ;;  %v824_v15 = vld [vmem:[%s2415_s2] sm:$0xff] }
  0x50   : > { %1398 = vmatprep.mubr.msk.f32.mxu0 %vm260_vm0, %v250_v16  ;;  %v455_v16 = vld [vmem:[%s2416_s3 + $0x8] sm:$0xff] }
  0x53   : > { %1399 = vmatmul.mubr.msk.f32.gmra.mrb[10].mxu0 %vm260_vm0, %v251_v17  ;;  %v454_v17 = vld [vmem:[%s2416_s3] sm:$0xff] }
  0x54   : > { %1401 = vmatprep.mubr.msk.f32.mxu0 %vm260_vm0, %v252_v18 }
  0x57   : > { %1402 = vmatmul.mubr.msk.f32.gmra.mrb[12].mxu0 %vm260_vm0, %v253_v19 }
  0x58   : > { %1404 = vmatprep.mubr.msk.f32.mxu0 %vm260_vm0, %v254_v20 }
  0x5b   : > { %1405 = vmatmul.mubr.msk.f32.gmra.mrb[14].mxu0 %vm260_vm0, %v255_v21 }
  0x5c   : > { %1495 = vmatprep.mubr.f32.mxu0 %v824_v15 }
 0x112   : > { %v2066_v22 = vpop.f32.mrb[0].mxu0 }
 0x113   : > { %v375_v23 = vpop.f32.mrb[1].mxu0 }
 0x114   : > { %1439 = vmatprep.mubr.msk.f32.mxu1 %vm518_vm1, %v375_v23  ;;  %v1662_v24 = vpack.i.bf16 %v2066_v22, %v375_v23 }
 0x116   : > { %1663 = vrot.lane.b32.xlu0 %v1662_v24, %s1899_s23  ;;  %v2070_v25 = vpop.f32.mrb[2].mxu0  ;;  %v456_v24 = vld [vmem:[%s2416_s3 + $0x10] sm:$0xff] }
 0x117   : > { %v2072_v26 = vpop.f32.mrb[3].mxu0 }
 0x118   : > { %v1667_v27 = vpack.i.bf16 %v2070_v25, %v2072_v26 }
 0x11a   : > { %1668 = vrot.lane.b32.xlu0 %v1667_v27, %s1899_s23  ;;  %v2076_v28 = vpop.f32.mrb[4].mxu0 }
 0x11b   : > { %v2078_v29 = vpop.f32.mrb[5].mxu0 }
 0x11c   : > { %v1672_v30 = vpack.i.bf16 %v2076_v28, %v2078_v29 }
 0x11e   : > { %1673 = vrot.lane.b32.xlu1 %v1672_v30, %s1899_s23  ;;  %v2082_v31 = vpop.f32.mrb[6].mxu0  ;;  %v459_v30 = vld [vmem:[%s2416_s3 + $0x28] sm:$0xff] }
 0x11f   : > { %v2084_v32 = vpop.f32.mrb[7].mxu0 }
 0x120   : > { %v1677_v33 = vpack.i.bf16 %v2082_v31, %v2084_v32 }
 0x122   : > { %1678 = vrot.lane.b32.xlu1 %v1677_v33, %s1899_s23  ;;  %v2088_v34 = vpop.f32.mrb[8].mxu0 }
 0x123   : > { %v2090_v35 = vpop.f32.mrb[9].mxu0 }
 0x124   : > { %v1682_v36 = vpack.i.bf16 %v2088_v34, %v2090_v35 }
 0x126   : > { %1683 = vrot.lane.b32.xlu0 %v1682_v36, %s1899_s23  ;;  %v2094_v37 = vpop.f32.mrb[10].mxu0 }
 0x127   : > { %v2096_v38 = vpop.f32.mrb[11].mxu0 }
 0x128   : > { %v1687_v39 = vpack.i.bf16 %v2094_v37, %v2096_v38 }
 0x12a   : > { %1688 = vrot.lane.b32.xlu1 %v1687_v39, %s1899_s23  ;;  %v2100_v40 = vpop.f32.mrb[12].mxu0 }
 0x12b   : > { %v2102_v41 = vpop.f32.mrb[13].mxu0 }
 0x12c   : > { %v1692_v42 = vpack.i.bf16 %v2100_v40, %v2102_v41 }
 0x12e   : > { %1693 = vrot.lane.b32.xlu0 %v1692_v42, %s1899_s23  ;;  %v2106_v43 = vpop.f32.mrb[14].mxu0 }
 0x12f   : > { %v2108_v44 = vpop.f32.mrb[15].mxu0 }
 0x130   : > { %v1697_v45 = vpack.i.bf16 %v2106_v43, %v2108_v44 }
 0x132   : > { %1698 = vrot.lane.b32.xlu1 %v1697_v45, %s1899_s23 }
 0x188   : > { %v1664_v46 = vpop.permute.xlu0 %1663 }
 0x189   : > { %v1666_v47 = vunpack.i.h.bf16 %v1664_v46  ;;  %v1665_v48 = vunpack.i.l.bf16 %v1664_v46  ;;  %v463_v46 = vld [vmem:[%s2416_s3 + $0x48] sm:$0xff] }
 0x18b   : > { %v1527_v50 = vpack.c.bf16 %v1666_v47, %v1665_v48 }
 0x18c   : > { %v1669_v51 = vpop.permute.xlu0 %1668 }
 0x18d   : > { %1529 = vmatprep.subr.msk.bf16.mxu1 %vm2114_vm2, %v1527_v50  ;;  %v1671_v52 = vunpack.i.h.bf16 %v1669_v51  ;;  %v1670_v53 = vunpack.i.l.bf16 %v1669_v51 }
 0x18e   : > { %1532 = vmatpush3.bf16.xpose.msk.msra.mxu1 %vm2114_vm2, %v1527_v50 }
 0x18f   : > { %v1533_v54 = vpack.c.bf16 %v1671_v52, %v1670_v53 }
 0x190   : > { %v1674_v55 = vpop.permute.xlu1 %1673 }
 0x191   : > { %1535 = vmatprep.subr.msk.bf16.mxu1 %vm2114_vm2, %v1533_v54  ;;  %v1676_v56 = vunpack.i.h.bf16 %v1674_v55  ;;  %v1675_v57 = vunpack.i.l.bf16 %v1674_v55 }
 0x193   : > { %v1539_v58 = vpack.c.bf16 %v1676_v56, %v1675_v57 }
 0x194   : > { %v1679_v59 = vpop.permute.xlu1 %1678 }
 0x195   : > { %v1681_v60 = vunpack.i.h.bf16 %v1679_v59  ;;  %v1680_v61 = vunpack.i.l.bf16 %v1679_v59 }
 0x196   : > { %1538 = vmatpush3.bf16.xpose.msk.msra.mxu1 %vm2114_vm2, %v1533_v54 }
 0x197   : > { %1541 = vmatprep.subr.msk.bf16.mxu1 %vm2114_vm2, %v1539_v58  ;;  %v1545_v62 = vpack.c.bf16 %v1681_v60, %v1680_v61  ;;  %v464_v61 = vld [vmem:[%s2416_s3 + $0x50] sm:$0xff] }
 0x198   : > { %v1684_v63 = vpop.permute.xlu0 %1683 }
 0x199   : > { %v1686_v0 = vunpack.i.h.bf16 %v1684_v63  ;;  %v1685_v1 = vunpack.i.l.bf16 %v1684_v63 }
 0x19b   : > { %v1551_v2 = vpack.c.bf16 %v1686_v0, %v1685_v1 }
 0x19c   : > { %v1689_v3 = vpop.permute.xlu1 %1688 }
 0x19d   : > { %v1691_v4 = vunpack.i.h.bf16 %v1689_v3  ;;  %v1690_v5 = vunpack.i.l.bf16 %v1689_v3 }
 0x19e   : > { %1544 = vmatpush3.bf16.xpose.msk.msra.mxu1 %vm2114_vm2, %v1539_v58  ;;  %v465_v58 = vld [vmem:[%s2416_s3 + $0x58] sm:$0xff] }
 0x19f   : > { %1547 = vmatprep.subr.msk.bf16.mxu1 %vm2114_vm2, %v1545_v62  ;;  %v1557_v6 = vpack.c.bf16 %v1691_v4, %v1690_v5 }
 0x1a0   : > { %v1694_v7 = vpop.permute.xlu0 %1693 }
 0x1a1   : > { %v1696_v8 = vunpack.i.h.bf16 %v1694_v7  ;;  %v1695_v9 = vunpack.i.l.bf16 %v1694_v7 }
 0x1a3   : > { %v1563_v10 = vpack.c.bf16 %v1696_v8, %v1695_v9  ;;  %v466_v9 = vld [vmem:[%s2416_s3 + $0x60] sm:$0xff] }
 0x1a4   : > { %v1699_v11 = vpop.permute.xlu1 %1698 }
 0x1a5   : > { %v1701_v12 = vunpack.i.h.bf16 %v1699_v11  ;;  %v1700_v13 = vunpack.i.l.bf16 %v1699_v11 }
 0x1a6   : > { %1550 = vmatpush3.bf16.xpose.msk.msra.mxu1 %vm2114_vm2, %v1545_v62 }
 0x1a7   : > { %1553 = vmatprep.subr.msk.bf16.mxu1 %vm2114_vm2, %v1551_v2  ;;  %v1569_v14 = vpack.c.bf16 %v1701_v12, %v1700_v13 }
 0x1ae   : > { %1556 = vmatpush3.bf16.xpose.msk.msra.mxu1 %vm2114_vm2, %v1551_v2 }
 0x1af   : > { %1559 = vmatprep.subr.msk.bf16.mxu1 %vm2114_vm2, %v1557_v6 }
 0x1b6   : > { %1562 = vmatpush3.bf16.xpose.msk.msra.mxu1 %vm2114_vm2, %v1557_v6  ;;  %v467_v6 = vld [vmem:[%s2416_s3 + $0x68] sm:$0xff] }
 0x1b7   : > { %1565 = vmatprep.subr.msk.bf16.mxu1 %vm2114_vm2, %v1563_v10 }
 0x1be   : > { %1568 = vmatpush3.bf16.xpose.msk.msra.mxu1 %vm2114_vm2, %v1563_v10 }
 0x1bf   : > { %1571 = vmatprep.subr.msk.bf16.mxu1 %vm2114_vm2, %v1569_v14 }
 0x1c6   : > { %1574 = vmatpush3.bf16.xpose.msk.msra.mxu1 %vm2114_vm2, %v1569_v14 }
 0x1cd   : > { %1440 = vmatmul.mubr.msk.f32.vlgmr.msra.gmra.mrb[0].mxu1 %vm518_vm1, %v2066_v22  ;;  %v457_v22 = vld [vmem:[%s2416_s3 + $0x18] sm:$0xff] }
 0x1ce   : > { %1442 = vmatprep.mubr.msk.f32.mxu1 %vm518_vm1, %v2072_v26 }
 0x1d1   : > { %1443 = vmatmul.mubr.msk.f32.gmra.mrb[2].mxu1 %vm518_vm1, %v2070_v25 }
 0x1d2   : > { %1445 = vmatprep.mubr.msk.f32.mxu1 %vm518_vm1, %v2078_v29 }
 0x1d5   : > { %1446 = vmatmul.mubr.msk.f32.gmra.mrb[4].mxu1 %vm518_vm1, %v2076_v28 }
 0x1d6   : > { %1448 = vmatprep.mubr.msk.f32.mxu1 %vm518_vm1, %v2084_v32  ;;  %v458_v32 = vld [vmem:[%s2416_s3 + $0x20] sm:$0xff] }
 0x1d9   : > { %1449 = vmatmul.mubr.msk.f32.gmra.mrb[6].mxu1 %vm518_vm1, %v2082_v31 }
 0x1da   : > { %1451 = vmatprep.mubr.msk.f32.mxu1 %vm518_vm1, %v2090_v35 }
 0x1dd   : > { %1452 = vmatmul.mubr.msk.f32.gmra.mrb[8].mxu1 %vm518_vm1, %v2088_v34 }
 0x1de   : > { %1454 = vmatprep.mubr.msk.f32.mxu1 %vm518_vm1, %v2096_v38  ;;  %v461_v38 = vld [vmem:[%s2416_s3 + $0x38] sm:$0xff] }
 0x1e1   : > { %1455 = vmatmul.mubr.msk.f32.gmra.mrb[10].mxu1 %vm518_vm1, %v2094_v37 }
 0x1e2   : > { %1457 = vmatprep.mubr.msk.f32.mxu1 %vm518_vm1, %v2102_v41 }
 0x1e5   : > { %1458 = vmatmul.mubr.msk.f32.gmra.mrb[12].mxu1 %vm518_vm1, %v2100_v40  ;;  %v460_v40 = vld [vmem:[%s2416_s3 + $0x30] sm:$0xff] }
 0x1e6   : > { %1460 = vmatprep.mubr.msk.f32.mxu1 %vm518_vm1, %v2108_v44 }
 0x1e9   : > { %1461 = vmatmul.mubr.msk.f32.gmra.mrb[14].mxu1 %vm518_vm1, %v2106_v43 }
 0x2a0   : > { %v1441_v18 = vpop.f32.mrb[0].mxu1 }
 0x2a1   : > { %v655_v19 = vadd.f32 %v1441_v18, %v455_v16  ;;  %v649_v20 = vpop.f32.mrb[1].mxu1  ;;  %v469_v18 = vld [vmem:[%s2416_s3 + $0x78] sm:$0xff] }
 0x2a2   : > { %v650_v21 = vadd.f32 %v649_v20, %v454_v17 }
 0x2a3   : > { %v1270_v23 = vmul.f32 -1.442695, %v655_v19 }
 0x2a4   : > { %v1269_v25 = vmul.f32 -1.442695, %v650_v21  ;;  %v1444_v26 = vpop.f32.mrb[2].mxu1  ;;  %v468_v21 = vld [vmem:[%s2416_s3 + $0x70] sm:$0xff] }
 0x2a5   : > { %1702 = vpow2.f32 %v1270_v23  ;;  %v665_v27 = vadd.f32 %v1444_v26, %v457_v22  ;;  %v659_v28 = vpop.f32.mrb[3].mxu1 }
 0x2a6   : > { %1704 = vpow2.f32 %v1269_v25  ;;  %v660_v29 = vadd.f32 %v659_v28, %v456_v24 }
 0x2a7   : > { %v1272_v31 = vmul.f32 -1.442695, %v665_v27 }
 0x2a8   : > { %v1271_v33 = vmul.f32 -1.442695, %v660_v29  ;;  %v1447_v34 = vpop.f32.mrb[4].mxu1 }
 0x2a9   : > { %1706 = vpow2.f32 %v1272_v31  ;;  %v675_v35 = vadd.f32 %v1447_v34, %v459_v30  ;;  %v669_v36 = vpop.f32.mrb[5].mxu1 }
 0x2aa   : > { %1708 = vpow2.f32 %v1271_v33  ;;  %v670_v37 = vadd.f32 %v669_v36, %v458_v32 }
 0x2ab   : > { %v1274_v39 = vmul.f32 -1.442695, %v675_v35 }
 0x2ac   : > { %v1273_v41 = vmul.f32 -1.442695, %v670_v37  ;;  %v1450_v42 = vpop.f32.mrb[6].mxu1 }
 0x2ad   : > { %1710 = vpow2.f32 %v1274_v39  ;;  %v685_v43 = vadd.f32 %v1450_v42, %v461_v38  ;;  %v679_v44 = vpop.f32.mrb[7].mxu1 }
 0x2ae   : > { %1712 = vpow2.f32 %v1273_v41  ;;  %v680_v45 = vadd.f32 %v679_v44, %v460_v40 }
 0x2af   : > { %v1703_v47 = vpop.eup %1702  ;;  %v1276_v48 = vmul.f32 -1.442695, %v685_v43 }
 0x2b0   : > { %v1705_v50 = vpop.eup %1704  ;;  %v777_v51 = vadd.f32 1.0, %v1703_v47  ;;  %v1275_v52 = vmul.f32 -1.442695, %v680_v45  ;;  %v1453_v53 = vpop.f32.mrb[8].mxu1 }
 0x2b1   : > { %v776_v54 = vadd.f32 1.0, %v1705_v50  ;;  %1714 = vpow2.f32 %v1276_v48  ;;  %v695_v55 = vadd.f32 %v1453_v53, %v463_v46  ;;  %v689_v56 = vpop.f32.mrb[9].mxu1 }
 0x2b2   : > { %1716 = vrcp.f32 %v777_v51  ;;  %v690_v57 = vadd.f32 %v689_v56, %v462_v49 }
 0x2b3   : > { %v1707_v59 = vpop.eup %1706  ;;  %1718 = vrcp.f32 %v776_v54  ;;  %v1278_v60 = vmul.f32 -1.442695, %v695_v55 }
 0x2b4   : > { %v1709_v62 = vpop.eup %1708  ;;  %v779_v63 = vadd.f32 1.0, %v1707_v59  ;;  %1720 = vpow2.f32 %v1275_v52  ;;  %v1277_v0 = vmul.f32 -1.442695, %v690_v57  ;;  %v1456_v1 = vpop.f32.mrb[10].mxu1 }
 0x2b5   : > { %v778_v2 = vadd.f32 1.0, %v1709_v62  ;;  %1722 = vpow2.f32 %v1278_v60  ;;  %v705_v3 = vadd.f32 %v1456_v1, %v465_v58  ;;  %v699_v4 = vpop.f32.mrb[11].mxu1 }
 0x2b6   : > { %1724 = vrcp.f32 %v779_v63  ;;  %v700_v5 = vadd.f32 %v699_v4, %v464_v61 }
 0x2b7   : > { %v1711_v7 = vpop.eup %1710  ;;  %1726 = vrcp.f32 %v778_v2  ;;  %v1280_v8 = vmul.f32 -1.442695, %v705_v3 }
 0x2b8   : > { %v1713_v10 = vpop.eup %1712  ;;  %v781_v11 = vadd.f32 1.0, %v1711_v7  ;;  %1728 = vpow2.f32 %v1277_v0  ;;  %v1279_v12 = vmul.f32 -1.442695, %v700_v5  ;;  %v1459_v13 = vpop.f32.mrb[12].mxu1 }
 0x2b9   : > { %v780_v14 = vadd.f32 1.0, %v1713_v10  ;;  %1730 = vpow2.f32 %v1280_v8  ;;  %v715_v15 = vadd.f32 %v1459_v13, %v467_v6  ;;  %v709_v16 = vpop.f32.mrb[13].mxu1  ;;  %v825_v8 = vld [vmem:[%s2415_s2 + $0x8] sm:$0xff]  ;;  %v827_v10 = vld [vmem:[%s2415_s2 + $0x18] sm:$0xff]  ;;  %v830_v13 = vld [vmem:[%s2415_s2 + $0x30] sm:$0xff] }
 0x2ba   : > { %1732 = vrcp.f32 %v781_v11  ;;  %v710_v17 = vadd.f32 %v709_v16, %v466_v9  ;;  %v826_v9 = vld [vmem:[%s2415_s2 + $0x10] sm:$0xff]  ;;  %v828_v11 = vld [vmem:[%s2415_s2 + $0x20] sm:$0xff]  ;;  %v833_v16 = vld [vmem:[%s2415_s2 + $0x48] sm:$0xff] }
 0x2bb   : > { %v1715_v19 = vpop.eup %1714  ;;  %1734 = vrcp.f32 %v780_v14  ;;  %v1282_v20 = vmul.f32 -1.442695, %v715_v15  ;;  %v831_v14 = vld [vmem:[%s2415_s2 + $0x38] sm:$0xff]  ;;  %v832_v15 = vld [vmem:[%s2415_s2 + $0x40] sm:$0xff] }
 0x2bc   : > { %v1717_v22 = vpop.eup %1716  ;;  %v783_v23 = vadd.f32 1.0, %v1715_v19  ;;  %1736 = vpow2.f32 %v1279_v12  ;;  %v1281_v24 = vmul.f32 -1.442695, %v710_v17  ;;  %v1462_v25 = vpop.f32.mrb[14].mxu1  ;;  %v829_v12 = vld [vmem:[%s2415_s2 + $0x28] sm:$0xff]  ;;  %v834_v17 = vld [vmem:[%s2415_s2 + $0x50] sm:$0xff] }
 0x2bd   : > { %v1719_v26 = vpop.eup %1718  ;;  %1738 = vpow2.f32 %v1282_v20  ;;  %v725_v27 = vadd.f32 %v1462_v25, %v469_v18  ;;  %v719_v28 = vpop.f32.mrb[15].mxu1  ;;  %v835_v18 = vld [vmem:[%s2415_s2 + $0x58] sm:$0xff]  ;;  %v836_v19 = vld [vmem:[%s2415_s2 + $0x60] sm:$0xff]  ;;  %v837_v20 = vld [vmem:[%s2415_s2 + $0x68] sm:$0xff] }
 0x2be   : > { %v1721_v29 = vpop.eup %1720  ;;  %1740 = vrcp.f32 %v783_v23  ;;  %v720_v30 = vadd.f32 %v719_v28, %v468_v21  ;;  %v1575_v31 = vpack.c.bf16 %v1717_v22, %v1719_v26  ;;  %v838_v21 = vld [vmem:[%s2415_s2 + $0x70] sm:$0xff]  ;;  %v839_v22 = vld [vmem:[%s2415_s2 + $0x78] sm:$0xff]  ;;  %v845_v28 = vld [vmem:[#allocation2 + $0x28] sm:$0xff] }
 0x2bf   : > { %v1723_v32 = vpop.eup %1722  ;;  %v782_v33 = vadd.f32 1.0, %v1721_v29  ;;  %1742 = vpow2.f32 %v1281_v24  ;;  %v1284_v34 = vmul.f32 -1.442695, %v725_v27  ;;  %v841_v27 = vld [vmem:[#allocation2 + $0x8] sm:$0xff]  ;;  %v840_v29 = vld [vmem:[#allocation2] sm:$0xff] }
 0x2c0   : > { %v1725_v35 = vpop.eup %1724  ;;  %v785_v36 = vadd.f32 1.0, %v1723_v32  ;;  %v1283_v37 = vmul.f32 -1.442695, %v720_v30  ;;  %1576 = vmatprep.subr.bf16.mxu0 %v1575_v31  ;;  %v844_v30 = vld [vmem:[#allocation2 + $0x20] sm:$0xff] }
 0x2c1   : > { %v1727_v38 = vpop.eup %1726  ;;  %1744 = vrcp.f32 %v782_v33  ;;  %1578 = vmatpush3.bf16.msra.mxu0 %v1575_v31 }
 0x2c2   : > { %v1729_v39 = vpop.eup %1728  ;;  %1746 = vrcp.f32 %v785_v36  ;;  %v1579_v40 = vpack.c.bf16 %v1725_v35, %v1727_v38  ;;  %v843_v36 = vld [vmem:[#allocation2 + $0x18] sm:$0xff] }
 0x2c3   : > { %v1731_v41 = vpop.eup %1730  ;;  %v784_v42 = vadd.f32 1.0, %v1729_v39  ;;  %1748 = vpow2.f32 %v1284_v34  ;;  %v847_v38 = vld [vmem:[#allocation2 + $0x38] sm:$0xff]  ;;  %v842_v39 = vld [vmem:[#allocation2 + $0x10] sm:$0xff] }
 0x2c4   : > { %v1733_v43 = vpop.eup %1732  ;;  %v787_v44 = vadd.f32 1.0, %v1731_v41  ;;  %1750 = vpow2.f32 %v1283_v37  ;;  %1580 = vmatprep.subr.bf16.mxu0 %v1579_v40  ;;  %v846_v41 = vld [vmem:[#allocation2 + $0x30] sm:$0xff] }
 0x2c5   : > { %v1735_v45 = vpop.eup %1734  ;;  %1752 = vrcp.f32 %v784_v42  ;;  %1582 = vmatpush3.bf16.msra.mxu0 %v1579_v40 }
 0x2c6   : > { %v1737_v46 = vpop.eup %1736  ;;  %v1583_v47 = vpack.c.bf16 %v1733_v43, %v1735_v45  ;;  %1754 = vrcp.f32 %v787_v44 }
 0x2c7   : > { %v1739_v48 = vpop.eup %1738  ;;  %v786_v49 = vadd.f32 1.0, %v1737_v46 }
 0x2c8   : > { %v1741_v50 = vpop.eup %1740  ;;  %v789_v51 = vadd.f32 1.0, %v1739_v48  ;;  %1584 = vmatprep.subr.bf16.mxu0 %v1583_v47 }
 0x2c9   : > { %v1743_v52 = vpop.eup %1742  ;;  %1756 = vrcp.f32 %v786_v49  ;;  %1586 = vmatpush3.bf16.msra.mxu0 %v1583_v47  ;;  %v849_v49 = vld [vmem:[#allocation2 + $0x48] sm:$0xff] }
 0x2ca   : > { %1758 = vrcp.f32 %v789_v51  ;;  %v788_v53 = vadd.f32 1.0, %v1743_v52  ;;  %v848_v51 = vld [vmem:[#allocation2 + $0x40] sm:$0xff] }
 0x2cb   : > { %v1745_v54 = vpop.eup %1744 }
 0x2cc   : > { %v1747_v55 = vpop.eup %1746  ;;  %1760 = vrcp.f32 %v788_v53  ;;  %v1587_v56 = vpack.c.bf16 %v1741_v50, %v1745_v54 }
 0x2cd   : > { %v1749_v57 = vpop.eup %1748 }
 0x2ce   : > { %v1751_v58 = vpop.eup %1750  ;;  %v791_v59 = vadd.f32 1.0, %v1749_v57  ;;  %1588 = vmatprep.subr.bf16.mxu0 %v1587_v56  ;;  %v851_v57 = vld [vmem:[#allocation2 + $0x58] sm:$0xff] }
 0x2cf   : > { %v1753_v60 = vpop.eup %1752  ;;  %v790_v61 = vadd.f32 1.0, %v1751_v58  ;;  %1590 = vmatpush3.bf16.msra.mxu0 %v1587_v56 }
 0x2d0   : > { %1762 = vrcp.f32 %v791_v59  ;;  %v1591_v62 = vpack.c.bf16 %v1747_v55, %v1753_v60  ;;  %v1755_v63 = vpop.eup %1754  ;;  %v850_v59 = vld [vmem:[#allocation2 + $0x50] sm:$0xff] }
 0x2d1   : > { %1764 = vrcp.f32 %v790_v61 }
 0x2d2   : > { %1592 = vmatprep.subr.bf16.mxu0 %v1591_v62 }
 0x2d3   : > { %v1757_v0 = vpop.eup %1756  ;;  %1594 = vmatpush3.bf16.msra.mxu0 %v1591_v62 }
 0x2d4   : > { %v1759_v1 = vpop.eup %1758  ;;  %v1595_v2 = vpack.c.bf16 %v1755_v63, %v1757_v0 }
 0x2d6   : > { %v1761_v3 = vpop.eup %1760  ;;  %1596 = vmatprep.subr.bf16.mxu0 %v1595_v2 }
 0x2d7   : > { %1598 = vmatpush3.bf16.msra.mxu0 %v1595_v2  ;;  %v1599_v4 = vpack.c.bf16 %v1759_v1, %v1761_v3  ;;  %v853_v1 = vld [vmem:[#allocation2 + $0x68] sm:$0xff]  ;;  %v852_v3 = vld [vmem:[#allocation2 + $0x60] sm:$0xff] }
 0x2d9   : > { %1600 = vmatprep.subr.bf16.mxu0 %v1599_v4 }
 0x2da   : > { %v1763_v5 = vpop.eup %1762 }
 0x2db   : > { %v1765_v6 = vpop.eup %1764  ;;  %1602 = vmatpush3.bf16.msra.mxu0 %v1599_v4 }
 0x2dc   : > { %v1603_v7 = vpack.c.bf16 %v1763_v5, %v1765_v6 }
 0x2de   : > { %1604 = vmatprep.subr.bf16.mxu0 %v1603_v7 }
 0x2df   : > { %1606 = vmatpush3.bf16.msra.mxu0 %v1603_v7 }
 0x2e2   : > { %1496 = vmatmul.mubr.f32.vlgmr.msra.gmra.mrb[16].mxu0 %v825_v8 }
 0x2e3   : > { %1498 = vmatprep.mubr.f32.mxu0 %v826_v9  ;;  %v855_v9 = vld [vmem:[#allocation2 + $0x78] sm:$0xff] }
 0x2e6   : > { %1499 = vmatmul.mubr.f32.gmra.mrb[18].mxu0 %v827_v10 }
 0x2e7   : > { %1501 = vmatprep.mubr.f32.mxu0 %v828_v11  ;;  %v854_v11 = vld [vmem:[#allocation2 + $0x70] sm:$0xff] }
 0x2ea   : > { %1502 = vmatmul.mubr.f32.gmra.mrb[20].mxu0 %v829_v12 }
 0x2eb   : > { %1504 = vmatprep.mubr.f32.mxu0 %v830_v13 }
 0x2ee   : > { %1505 = vmatmul.mubr.f32.gmra.mrb[22].mxu0 %v831_v14 }
 0x2ef   : > { %1507 = vmatprep.mubr.f32.mxu0 %v832_v15 }
 0x2f2   : > { %1508 = vmatmul.mubr.f32.gmra.mrb[24].mxu0 %v833_v16 }
 0x2f3   : > { %1510 = vmatprep.mubr.f32.mxu0 %v834_v17 }
 0x2f6   : > { %1511 = vmatmul.mubr.f32.gmra.mrb[26].mxu0 %v835_v18 }
 0x2f7   : > { %1513 = vmatprep.mubr.f32.mxu0 %v836_v19 }
 0x2fa   : > { %1514 = vmatmul.mubr.f32.gmra.mrb[28].mxu0 %v837_v20 }
 0x2fb   : > { %1516 = vmatprep.mubr.f32.mxu0 %v838_v21 }
 0x2fe   : > { %1517 = vmatmul.mubr.f32.gmra.mrb[30].mxu0 %v839_v22 }
 0x3b5   : > { %v1497_v23 = vpop.f32.mrb[16].mxu0 }
 0x3b6   : > { %v922_v24 = vpop.f32.mrb[17].mxu0  ;;  %v2276_v32 = vadd.f32 %v1497_v23, %v841_v27 }
 0x3b7   : > { %v2280_v35 = vadd.f32 %v922_v24, %v840_v29 }
 0x3b9   : > { %v1500_v25 = vpop.f32.mrb[18].mxu0 }
 0x3ba   : > { %v932_v26 = vpop.f32.mrb[19].mxu0  ;;  %v2288_v44 = vadd.f32 %v1500_v25, %v843_v36 }
 0x3bb   : > { %v2292_v47 = vadd.f32 %v932_v26, %v842_v39 }
 0x3bd   : > { %v1503_v31 = vpop.f32.mrb[20].mxu0 }
 0x3be   : > { %v2278_v33 = vadd.f32 %v1503_v31, %v845_v28  ;;  %v942_v34 = vpop.f32.mrb[21].mxu0 }
 0x3bf   : > { %v2282_v37 = vadd.f32 %v942_v34, %v844_v30 }
 0x3c0   : > { %v1002_v40 = vmax.f32 %v2276_v32, %v2278_v33 }
 0x3c1   : > { %v1001_v42 = vmax.f32 %v2280_v35, %v2282_v37  ;;  %v1506_v43 = vpop.f32.mrb[22].mxu0 }
 0x3c2   : > { %v2290_v45 = vadd.f32 %v1506_v43, %v847_v38  ;;  %v952_v46 = vpop.f32.mrb[23].mxu0 }
 0x3c3   : > { %v2294_v48 = vadd.f32 %v952_v46, %v846_v41 }
 0x3c4   : > { %v1004_v50 = vmax.f32 %v2288_v44, %v2290_v45 }
 0x3c5   : > { %v1003_v52 = vmax.f32 %v2292_v47, %v2294_v48  ;;  %v1509_v53 = vpop.f32.mrb[24].mxu0 }
 0x3c6   : > { %v2300_v54 = vadd.f32 %v1509_v53, %v849_v49  ;;  %v962_v55 = vpop.f32.mrb[25].mxu0 }
 0x3c7   : > { %v2302_v56 = vadd.f32 %v962_v55, %v848_v51 }
 0x3c8   : > { %v1006_v58 = vmax.f32 %v1002_v40, %v2300_v54 }
 0x3c9   : > { %v1005_v60 = vmax.f32 %v1001_v42, %v2302_v56  ;;  %v1512_v61 = vpop.f32.mrb[26].mxu0 }
 0x3ca   : > { %v2306_v62 = vadd.f32 %v1512_v61, %v851_v57  ;;  %v972_v63 = vpop.f32.mrb[27].mxu0 }
 0x3cb   : > { %v2308_v0 = vadd.f32 %v972_v63, %v850_v59 }
 0x3cc   : > { %v1008_v2 = vmax.f32 %v1004_v50, %v2306_v62 }
 0x3cd   : > { %v1007_v4 = vmax.f32 %v1003_v52, %v2308_v0  ;;  %v1515_v5 = vpop.f32.mrb[28].mxu0 }
 0x3ce   : > { %v2312_v6 = vadd.f32 %v1515_v5, %v853_v1  ;;  %v982_v7 = vpop.f32.mrb[29].mxu0 }
 0x3cf   : > { %v2314_v8 = vadd.f32 %v982_v7, %v852_v3 }
 0x3d0   : > { %v1010_v10 = vmax.f32 %v1006_v58, %v2312_v6 }
 0x3d1   : > { %v1009_v12 = vmax.f32 %v1005_v60, %v2314_v8  ;;  %v1518_v13 = vpop.f32.mrb[30].mxu0 }
 0x3d2   : > { %v2318_v14 = vadd.f32 %v1518_v13, %v855_v9  ;;  %v992_v15 = vpop.f32.mrb[31].mxu0 }
 0x3d3   : > { %v1013_v16 = vmax.f32 %v1009_v12, %v1010_v10  ;;  %v2320_v17 = vadd.f32 %v992_v15, %v854_v11 }
 0x3d4   : > { %v1012_v18 = vmax.f32 %v1008_v2, %v2318_v14 }
 0x3d5   : > { %v1011_v19 = vmax.f32 %v1007_v4, %v2320_v17 }
 0x3d7   : > { %v1014_v20 = vmax.f32 %v1011_v19, %v1012_v18 }
 0x3d9   : > { %v1015_v21 = vmax.f32 %v1013_v16, %v1014_v20 }
 0x3db   : > { %v1016_v22 = vrot.slane %v1015_v21, 4 }
 0x3dd   : > { %v1017_v23 = vmax.f32 %v1015_v21, %v1016_v22 }
 0x3df   : > { %v1018_v24 = vrot.slane %v1017_v23, 2 }
 0x3e1   : > { %v1019_v25 = vmax.f32 %v1017_v23, %v1018_v24 }
 0x3e3   : > { %v1020_v26 = vrot.slane %v1019_v25, 1 }
 0x3e5   : > { %v1021_v27 = vmax.f32 %v1019_v25, %v1020_v26 }
 0x3e7   : > { %v1022_v28 = vsub.f32 %v2280_v35, %v1021_v27  ;;  %v1023_v29 = vsub.f32 %v2276_v32, %v1021_v27  ;;  %v1024_v30 = vsub.f32 %v2292_v47, %v1021_v27  ;;  %v1025_v31 = vsub.f32 %v2288_v44, %v1021_v27 }
 0x3e8   : > { %v1026_v34 = vsub.f32 %v2282_v37, %v1021_v27  ;;  %v1027_v36 = vsub.f32 %v2278_v33, %v1021_v27  ;;  %v1028_v38 = vsub.f32 %v2294_v48, %v1021_v27  ;;  %v1029_v39 = vsub.f32 %v2290_v45, %v1021_v27 }
 0x3e9   : > { %v1030_v40 = vsub.f32 %v2302_v56, %v1021_v27  ;;  %v1031_v41 = vsub.f32 %v2300_v54, %v1021_v27  ;;  %v1032_v35 = vsub.f32 %v2308_v0, %v1021_v27  ;;  %v1033_v32 = vsub.f32 %v2306_v62, %v1021_v27 }
 0x3ea   : > { %v1034_v42 = vsub.f32 %v2314_v8, %v1021_v27  ;;  %v1035_v43 = vsub.f32 %v2312_v6, %v1021_v27  ;;  %v1036_v37 = vsub.f32 %v2320_v17, %v1021_v27  ;;  %v1037_v33 = vsub.f32 %v2318_v14, %v1021_v27 }
 0x3eb   : > { %v1038_v44 = vmul.f32 1.442695, %v1022_v28  ;;  %v1040_v46 = vmul.f32 1.442695, %v1023_v29  ;;  %v1042_v47 = vmul.f32 1.442695, %v1024_v30 }
 0x3ec   : > { %v1044_v45 = vmul.f32 1.442695, %v1025_v31  ;;  %v1046_v48 = vmul.f32 1.442695, %v1026_v34  ;;  %v1048_v49 = vmul.f32 1.442695, %v1027_v36 }
 0x3ed   : > { %1766 = vpow2.f32 %v1038_v44  ;;  %v1050_v50 = vmul.f32 1.442695, %v1028_v38  ;;  %v1052_v51 = vmul.f32 1.442695, %v1029_v39  ;;  %v1054_v54 = vmul.f32 1.442695, %v1030_v40 }
 0x3ee   : > { %1768 = vpow2.f32 %v1040_v46  ;;  %v1056_v57 = vmul.f32 1.442695, %v1031_v41  ;;  %v1058_v60 = vmul.f32 1.442695, %v1032_v35  ;;  %v1060_v63 = vmul.f32 1.442695, %v1033_v32 }
 0x3ef   : > { %1770 = vpow2.f32 %v1042_v47  ;;  %v1062_v2 = vmul.f32 1.442695, %v1034_v42  ;;  %v1064_v5 = vmul.f32 1.442695, %v1035_v43  ;;  %v1066_v8 = vmul.f32 1.442695, %v1036_v37 }
 0x3f0   : > { %1772 = vpow2.f32 %v1044_v45  ;;  %v1068_v11 = vmul.f32 1.442695, %v1037_v33 }
 0x3f1   : > { %1774 = vpow2.f32 %v1046_v48 }
 0x3f2   : > { %1776 = vpow2.f32 %v1048_v49 }
 0x3f3   : > { %1778 = vpow2.f32 %v1050_v50 }
 0x3f4   : > { %1780 = vpow2.f32 %v1052_v51 }
 0x3f5   : > { %1782 = vpow2.f32 %v1054_v54 }
 0x3f6   : > { %1784 = vpow2.f32 %v1056_v57 }
 0x3f7   : > { %v1767_v52 = vpop.eup %1766  ;;  %1786 = vpow2.f32 %v1058_v60 }
 0x3f8   : > { %v1769_v53 = vpop.eup %1768  ;;  %1788 = vpow2.f32 %v1060_v63 }
 0x3f9   : > { %v1070_v55 = vadd.f32 %v1769_v53, %v1767_v52  ;;  %v1771_v56 = vpop.eup %1770  ;;  %1790 = vpow2.f32 %v1062_v2 }
 0x3fa   : > { %v1773_v59 = vpop.eup %1772  ;;  %1792 = vpow2.f32 %v1064_v5 }
 0x3fb   : > { %v1071_v58 = vadd.f32 %v1771_v56, %v1070_v55  ;;  %v1775_v62 = vpop.eup %1774  ;;  %1794 = vpow2.f32 %v1066_v8 }
 0x3fc   : > { %v1777_v1 = vpop.eup %1776  ;;  %1796 = vpow2.f32 %v1068_v11 }
 0x3fd   : > { %v1072_v61 = vadd.f32 %v1773_v59, %v1071_v58  ;;  %v1779_v4 = vpop.eup %1778 }
 0x3fe   : > { %v1781_v7 = vpop.eup %1780 }
 0x3ff   : > { %v1073_v0 = vadd.f32 %v1775_v62, %v1072_v61  ;;  %v1783_v10 = vpop.eup %1782 }
 0x400   : > { %v1785_v13 = vpop.eup %1784 }
 0x401   : > { %v1074_v3 = vadd.f32 %v1777_v1, %v1073_v0  ;;  %v1787_v15 = vpop.eup %1786 }
 0x402   : > { %v1789_v17 = vpop.eup %1788 }
 0x403   : > { %v1075_v6 = vadd.f32 %v1779_v4, %v1074_v3  ;;  %v1791_v19 = vpop.eup %1790 }
 0x404   : > { %v1793_v21 = vpop.eup %1792 }
 0x405   : > { %v1076_v9 = vadd.f32 %v1781_v7, %v1075_v6  ;;  %v1795_v23 = vpop.eup %1794 }
 0x406   : > { %v1797_v25 = vpop.eup %1796 }
 0x407   : > { %v1077_v12 = vadd.f32 %v1783_v10, %v1076_v9 }
 0x409   : > { %v1078_v14 = vadd.f32 %v1785_v13, %v1077_v12 }
 0x40b   : > { %v1079_v16 = vadd.f32 %v1787_v15, %v1078_v14 }
 0x40d   : > { %v1080_v18 = vadd.f32 %v1789_v17, %v1079_v16 }
 0x40f   : > { %v1081_v20 = vadd.f32 %v1791_v19, %v1080_v18 }
 0x411   : > { %v1082_v22 = vadd.f32 %v1793_v21, %v1081_v20 }
 0x413   : > { %v1083_v24 = vadd.f32 %v1795_v23, %v1082_v22 }
 0x415   : > { %v1084_v26 = vadd.f32 %v1797_v25, %v1083_v24 }
 0x417   : > { %v1085_v27 = vrot.slane %v1084_v26, 4 }
 0x419   : > { %v1086_v28 = vadd.f32 %v1085_v27, %v1084_v26 }
 0x41b   : > { %v1087_v29 = vrot.slane %v1086_v28, 2 }
 0x41d   : > { %v1088_v30 = vadd.f32 %v1087_v29, %v1086_v28 }
 0x41f   : > { %v1089_v31 = vrot.slane %v1088_v30, 1 }
 0x421   : > { %v1090_v34 = vadd.f32 %v1089_v31, %v1088_v30 }
 0x423   : > { %1798 = vrcp.f32 %v1090_v34 }
 0x42d   : > { %v1799_v36 = vpop.eup %1798 }
 0x42e   : > { %v1092_v38 = vmul.f32 %v1799_v36, %v1767_v52  ;;  %v1093_v39 = vmul.f32 %v1799_v36, %v1769_v53  ;;  %v1094_v40 = vmul.f32 %v1799_v36, %v1771_v56  ;;  %v1095_v41 = vmul.f32 %v1799_v36, %v1773_v59 }
 0x42f   : > { %v1096_v35 = vmul.f32 %v1799_v36, %v1775_v62  ;;  %v1097_v32 = vmul.f32 %v1799_v36, %v1777_v1  ;;  %v1098_v42 = vmul.f32 %v1799_v36, %v1779_v4  ;;  %v1099_v43 = vmul.f32 %v1799_v36, %v1781_v7 }
 0x430   : > { %v1100_v37 = vmul.f32 %v1799_v36, %v1783_v10  ;;  %v1101_v33 = vmul.f32 %v1799_v36, %v1785_v13  ;;  %v1102_v44 = vmul.f32 %v1799_v36, %v1787_v15  ;;  %v1103_v46 = vmul.f32 %v1799_v36, %v1789_v17  ;;  %1108 = vst [vmem:[%s2344_s9] sm:$0xff] %v1092_v38 }
 0x431   : > { %1109 = vst [vmem:[%s2344_s9 + $0x8] sm:$0xff] %v1093_v39  ;;  %1110 = vst [vmem:[%s2344_s9 + $0x10] sm:$0xff] %v1094_v40  ;;  %v1104_v47 = vmul.f32 %v1799_v36, %v1791_v19  ;;  %v1105_v45 = vmul.f32 %v1799_v36, %v1793_v21  ;;  %v1106_v48 = vmul.f32 %v1799_v36, %v1795_v23 }
 0x432   : > { %1111 = vst [vmem:[%s2344_s9 + $0x18] sm:$0xff] %v1095_v41  ;;  %v1107_v49 = vmul.f32 %v1799_v36, %v1797_v25  ;;  %1112 = vst [vmem:[%s2344_s9 + $0x20] sm:$0xff] %v1096_v35 }
 0x433   : > { %1113 = vst [vmem:[%s2344_s9 + $0x28] sm:$0xff] %v1097_v32  ;;  %1114 = vst [vmem:[%s2344_s9 + $0x30] sm:$0xff] %v1098_v42 }
 0x434   : > { %1115 = vst [vmem:[%s2344_s9 + $0x38] sm:$0xff] %v1099_v43  ;;  %1116 = vst [vmem:[%s2344_s9 + $0x40] sm:$0xff] %v1100_v37 }
 0x435   : > { %1117 = vst [vmem:[%s2344_s9 + $0x48] sm:$0xff] %v1101_v33  ;;  %1118 = vst [vmem:[%s2344_s9 + $0x50] sm:$0xff] %v1102_v44 }
 0x436   : > { %1119 = vst [vmem:[%s2344_s9 + $0x58] sm:$0xff] %v1103_v46  ;;  %1120 = vst [vmem:[%s2344_s9 + $0x60] sm:$0xff] %v1104_v47 }
 0x437   : > { %1121 = vst [vmem:[%s2344_s9 + $0x68] sm:$0xff] %v1105_v45  ;;  %1122 = vst [vmem:[%s2344_s9 + $0x70] sm:$0xff] %v1106_v48 }
 0x438   : > { %1123 = vst [vmem:[%s2344_s9 + $0x78] sm:$0xff] %v1107_v49 }
 0x439   : > { %1841 = shalt.err (!%p1838_p7)
}
 0x43a   : > { %s1842_s15 = scalar_lea.hbm %s2354_s11, 2048  ;;  %s1846_s23 = scalar_lea.hbm %s2418_s5, 4096 }
 0x43b   : > { %p1843_p8 = scmp.ne.s32.totalorder %s2354_s11, %s1842_s15  ;;  %p1847_p1 = scmp.lt.u32.totalorder %s2354_s11, %s2418_s5 }
 0x43c   : > { %p1848_p0 = scmp.lt.u32.totalorder %s1846_s23, %s1842_s15  ;;  %p1850_p6 = scmp.lt.u32.totalorder %s1842_s15, %s2354_s11 }
 0x43d   : > { %p1844_p11 = pnand %p1843_p8, %p2431_p9 }
 0x43e   : > { %p1849_p5 = por %p1848_p0, %p1847_p1 }
 0x43f   : > { %p1845_p13 = pneg %p1844_p11 }
 0x440   : > { %p1851_p10 = por %p1850_p6, %p1849_p5 }
 0x442   : > { %p1852_p12 = pnand %p1851_p10, %p1845_p13 }
 0x444   : > { %1855 = shalt.err (!%p1852_p12)
}
 0x445   : > { %s1901_s6 = smov 128   ;;  %s1902_s9 = smov 8  }
 0x446   : > { %1611 = dma.vmem_to_hbm [thread:$0]  (%p2431_p9), %s2356_s10, 2048, %s2354_s11, %s2372_s30, %s1901_s6, %s1901_s6, %s1902_s9  }
 0x447 PF: > { %p1623_p2 = scmp.ge.s32.totalorder %s1894_s21, 2  ;;  %s1153_s22 = sand.u32 1, %s1882_s18  }
 0x448   : > { %p2432_p3 = scmp.ne.s32.totalorder %s2423_s29, 0  ;;  %s1154_s8 = scalar_lea.sflag [#allocation4], %s1153_s22 }
 0x44a   : > { %p1618_p4 = pnand %p1623_p2, %p2432_p3 }
 0x44c   : > { %1877 = dma.done.wait (!%p1618_p4), %s1154_s8, 2048  }
 0x44d   : > { %1879 = vsyncadd (!%p1618_p4), %s1154_s8, 4294965248  ;;  %p16_p7 = scmp.ge.s32.totalorder %s1958_s24, 4   ;;  %s2433_s18 = smov %s1886_s19 }
 0x44e   : > { %s2434_s19 = smov %s1890_s20  ;;  %s2435_s20 = smov %s1969_s27 }
 0x44f   : > { %s2436_s21 = smov %s1958_s24  ;;  %18 = sbr.rel (!%p16_p7) target bundleno = 4 (0x4), region = 80 }
 0x456   :  { %1159 = vsyncpa [#allocation3], 1 }
 0x457   :  { %1161 = vsyncpa [#allocation3 + $0x1], 1 }
 0x458   :  { %1162 = vsyncpa [#allocation4], 1 }
 0x459   :  { %1164 = vsyncpa [#allocation4 + $0x1], 1 }

</bundles_post_ra>
